<compile_context>
chip_gen: v7x
topology: tpu7x:2x2x1
jax: 0.10.0
libtpu: 0.0.40
codegen_flags: <defaults>
</compile_context>

<pallas_src>
import math
from functools import partial

import jax
import jax.numpy as jnp
from jax.experimental import pallas as pl
from jax.experimental.pallas import tpu as pltpu

_INV_SQRT2 = 1.0 / math.sqrt(2.0)


def _cdiv(a, b):
    return -(-a // b)


def _round_up(a, b):
    return ((a + b - 1) // b) * b


def _fused_conv_bn_gelu_kernel(x_ref, w_ref, gamma_ref, beta_ref, o_ref,
                               sum_ref, ssq_ref, scale_ref, shift_ref,
                               ycache_ref=None, *, inv_m, eps):
    p = pl.program_id(0)   # 0 = stats pass, 1 = normalize + write pass
    i = pl.program_id(1)   # row-tile index

    @pl.when(p == 0)
    def _stats_pass():
        # bf16 operands, f32 accumulation on the MXU.  Causal mask already folded into w_ref.
        u = jnp.dot(x_ref[...], w_ref[...], preferred_element_type=jnp.float32)

        @pl.when(i == 0)
        def _init():
            sum_ref[...] = jnp.zeros_like(sum_ref)
            ssq_ref[...] = jnp.zeros_like(ssq_ref)

        # TODO(synk): one-pass E[u^2]-E[u]^2 in f32; fine for roughly zero-mean activations,
        # switch to shifted/Welford accumulation if |mean| >> std in the target workload.
        sum_ref[...] += jnp.sum(u, axis=0, keepdims=True)
        ssq_ref[...] += jnp.sum(u * u, axis=0, keepdims=True)
        if ycache_ref is not None:
            ycache_ref[i] = u.astype(jnp.bfloat16)      # persist y for pass 1 (no HBM re-read)

    @pl.when(p == 1)
    def _normalize_pass():
        @pl.when(i == 0)
        def _hoist_bn_affine():
            mean = sum_ref[...] * inv_m
            var = ssq_ref[...] * inv_m - mean * mean     # biased variance (BN train mode)
            scale = gamma_ref[...] * jax.lax.rsqrt(var + eps)
            scale_ref[...] = scale
            shift_ref[...] = beta_ref[...] - mean * scale   # conv bias cancels under BN

        if ycache_ref is not None:
            u = ycache_ref[i].astype(jnp.float32)        # VMEM hit: no x re-fetch, no MXU
        else:
            u = jnp.dot(x_ref[...], w_ref[...], preferred_element_type=jnp.float32)
        z = u * scale_ref[...] + shift_ref[...]
        # nn.GELU() default is the exact (erf) form.
        o_ref[...] = (0.5 * z * (1.0 + jax.lax.erf(z * _INV_SQRT2))).astype(o_ref.dtype)


def temporal_causal_conv(x, conv_w, conv_b, gamma, beta, mask, *,
                         eps=1e-5, tm=1024, out_dtype=jnp.float32):
    B, C, H, W, T = x.shape
    Cout, Cin, K = conv_w.shape
    assert Cin == H * W and Cout == H * W, "module requires in=out=H*W channels"
    assert K == 1, "original module only runs with kernel_size == 1 (see TODO)"
    del conv_b  # per-channel constant offset: cancels exactly under train-mode BatchNorm

    M = B * C * T
    # Balanced tiling: padding bounded to < 8 rows per tile instead of up to tm-1 rows.
    ntiles = max(1, _cdiv(M, tm))
    tm_eff = _round_up(_cdiv(M, ntiles), 8)
    Mp = ntiles * tm_eff

    # ---- VMEM-aware sizing (v5e/v6e: 128 MiB, v7x: 64 MiB per TC) --------------------
    try:
        vmem_cap = int(pltpu.get_tpu_info().vmem_capacity_bytes)
    except Exception:
        vmem_cap = 64 * 1024 * 1024   # conservative (v7x per-TC)

    out_itemsize = jnp.dtype(out_dtype).itemsize
    base_need = (2 * tm_eff * Cin * 2                 # x tile, double-buffered, bf16
                 + Cin * Cout * 2                     # resident weight, bf16
                 + 2 * tm_eff * Cout * out_itemsize   # out tile, double-buffered
                 + 4 * Cout * 4)                      # sum/ssq/scale/shift scratch
    cache_bytes = ntiles * tm_eff * Cout * 2          # bf16 y-cache
    use_cache = (base_need + cache_bytes) <= int(0.70 * vmem_cap)
    total_need = base_need + (cache_bytes if use_cache else 0)
    vmem_limit = int(min(0.9 * vmem_cap,
                         max(32 * 1024 * 1024, int(1.5 * total_need) + (4 << 20))))

    # ---- host-side glue (single fused transpose+cast+pad, rest left to XLA) ----------
    # (B,C,H,W,T) -> (B,C,T,H,W) -> (M, Cin); rows index (b,c,t).  bf16 halves the
    # dominant HBM read of x; accumulation stays f32 inside the kernel.
    x2 = jnp.transpose(x, (0, 1, 4, 2, 3)).reshape(M, Cin).astype(jnp.bfloat16)
    if Mp != M:
        x2 = jnp.pad(x2, ((0, Mp - M), (0, 0)))      # zero rows add 0 to sum/ssq

    # fold the causal mask (a scalar for K == 1) into the weight.
    m0 = jnp.asarray(mask, jnp.float32).reshape(-1)[0]
    w2 = (jnp.transpose(conv_w[:, :, 0].astype(jnp.float32)) * m0).astype(jnp.bfloat16)
    gamma2 = gamma.reshape(1, Cout).astype(jnp.float32)
    beta2 = beta.reshape(1, Cout).astype(jnp.float32)

    cost = pl.CostEstimate(
        flops=2 * Mp * Cin * Cout * (1 if use_cache else 2),
        transcendentals=Mp * Cout,                    # erf
        bytes_accessed=(Mp * Cin * 2 * (1 if use_cache else 2)
                        + Cin * Cout * 2 + 2 * Cout * 4
                        + Mp * Cout * out_itemsize),
    )

    # With the y-cache, pass 1 maps the x block to (0, 0) so x is never re-streamed
    # from HBM (block stays resident after at most one redundant fetch).
    if use_cache:
        x_map = lambda p, i: (i * (1 - p), 0)
    else:
        x_map = lambda p, i: (i, 0)

    scratch_shapes = [
        pltpu.VMEM((1, Cout), jnp.float32),   # sum
        pltpu.VMEM((1, Cout), jnp.float32),   # sum of squares
        pltpu.VMEM((1, Cout), jnp.float32),   # hoisted BN scale
        pltpu.VMEM((1, Cout), jnp.float32),   # hoisted BN shift
    ]
    if use_cache:
        scratch_shapes.append(pltpu.VMEM((ntiles, tm_eff, Cout), jnp.bfloat16))

    out = pl.pallas_call(
        partial(_fused_conv_bn_gelu_kernel, inv_m=1.0 / M, eps=eps),
        out_shape=jax.ShapeDtypeStruct((Mp, Cout), out_dtype),
        grid_spec=pltpu.PrefetchScalarGridSpec(
            num_scalar_prefetch=0,
            grid=(2, ntiles),                             # (pass, row tile)
            in_specs=[
                pl.BlockSpec((tm_eff, Cin), x_map),
                pl.BlockSpec((Cin, Cout), lambda p, i: (0, 0)),   # resident weight
                pl.BlockSpec((1, Cout), lambda p, i: (0, 0)),
                pl.BlockSpec((1, Cout), lambda p, i: (0, 0)),
            ],
            # Pass 0 never writes the output; mapping all pass-0 steps to block 0 keeps the
            # output buffer resident (no garbage writeback before pass-1 tile 0 overwrites
            # block 0); pass 1 streams it lane-dense (Cout = 128).
            out_specs=pl.BlockSpec((tm_eff, Cout), lambda p, i: (p * i, 0)),
            scratch_shapes=scratch_shapes,
        ),
        compiler_params=pltpu.CompilerParams(
            # shared stats / y-cache scratch across tiles => both axes must stay serial.
            dimension_semantics=("arbitrary", "arbitrary"),
            vmem_limit_bytes=vmem_limit,
        ),
        cost_estimate=cost,
    )(x2, w2, gamma2, beta2)

    out = out[:M]
    # glue: (B*C*T, H*W) -> (B,C,T,H,W) -> (B,C,H,W,T)  (matches the PyTorch tail
    # permute(0,2,1).reshape(B,C,T,H,W).permute(0,1,3,4,2)).
    return jnp.transpose(out.reshape(B, C, T, H, W), (0, 1, 3, 4, 2))


def _reference(x, conv_w, conv_b, gamma, beta, mask, eps=1e-5):
    """Pure-JAX f32 mirror of the PyTorch forward (K == 1, BatchNorm train mode)."""
    B, C, H, W, T = x.shape
    xp = jnp.transpose(x, (0, 1, 4, 2, 3)).reshape(B * C, T, H * W)
    xp = jnp.transpose(xp, (0, 2, 1))                              # (BC, HW, T)
    y = jnp.einsum("oi,nit->not", conv_w[:, :, 0], xp,
                   precision=jax.lax.Precision.HIGHEST) + conv_b[None, :, None]
    y = y * mask.reshape(1, 1, -1)
    mean = jnp.mean(y, axis=(0, 2), keepdims=True)
    var = jnp.mean((y - mean) ** 2, axis=(0, 2), keepdims=True)    # biased
    y = (y - mean) / jnp.sqrt(var + eps)
    y = y * gamma[None, :, None] + beta[None, :, None]
    y = jax.nn.gelu(y, approximate=False)
    y = jnp.transpose(y, (0, 2, 1)).reshape(B, C, T, H, W)
    return jnp.transpose(y, (0, 1, 3, 4, 2))


if __name__ == "__main__":
    B, C, H, W, T = 2, 4, 8, 16, 8          # x: (B, C, H, W, T)
    Cin = Cout = H * W                       # = 128
    K = 1                                    # only runnable config of the module

    key = jax.random.PRNGKey(0)
    kx, kw, kb, kg, kbeta = jax.random.split(key, 5)
    x = jax.random.normal(kx, (B, C, H, W, T), dtype=jnp.float32)

    bound = 1.0 / math.sqrt(Cin * K)
    conv_w = jax.random.uniform(kw, (Cout, Cin, K), jnp.float32, -bound, bound)
    conv_b = jax.random.uniform(kb, (Cout,), jnp.float32, -bound, bound)
    gamma = 1.0 + 0.1 * jax.random.normal(kg, (Cout,), jnp.float32)
    beta = 0.1 * jax.random.normal(kbeta, (Cout,), jnp.float32)
    # causal mask exactly as the module builds it: ones(K); mask[K//2+1:] = 0
    mask = jnp.ones((K,), jnp.float32).at[K // 2 + 1:].set(0.0)

    out = temporal_causal_conv(x, conv_w, conv_b, gamma, beta, mask)
    out = jax.block_until_ready(out)

    assert out.shape == x.shape and out.dtype == jnp.float32
    ref = _reference(x, conv_w, conv_b, gamma, beta, mask)
    max_err = float(jnp.max(jnp.abs(out - ref)))
    # bf16 MXU operands (f32 accumulation) vs. an f32 HIGHEST-precision reference:
    # expected max abs error ~1e-2 after BatchNorm rescaling; 3e-2 leaves margin.
    assert max_err < 3e-2, f"mismatch vs reference: {max_err}"

    print("KERNEL_OK")
</pallas_src>

<mosaic_0001>
module attributes {stable_mosaic.version = 11 : i64} {
  func.func @_fused_conv_bn_gelu_kernel(%arg0: i32, %arg1: i32, %arg2: memref<64x128xbf16, #tpu.memory_space<vmem>>, %arg3: memref<128x128xbf16, #tpu.memory_space<vmem>>, %arg4: memref<1x128xf32, #tpu.memory_space<vmem>>, %arg5: memref<1x128xf32, #tpu.memory_space<vmem>>, %arg6: memref<64x128xf32, #tpu.memory_space<vmem>>, %arg7: memref<1x128xf32, #tpu.memory_space<vmem>>, %arg8: memref<1x128xf32, #tpu.memory_space<vmem>>, %arg9: memref<1x128xf32, #tpu.memory_space<vmem>>, %arg10: memref<1x128xf32, #tpu.memory_space<vmem>>, %arg11: memref<1x64x128xbf16, #tpu.memory_space<vmem>>) attributes {dimension_semantics = [#tpu.dimension_semantics<arbitrary>, #tpu.dimension_semantics<arbitrary>], iteration_bounds = array<i64: 2, 1>, scalar_prefetch = 0 : i64, scratch_operands = 5 : i64, tpu.core_type = #tpu.core_type<tc>, window_params = [{transform_indices = @transform_0, window_bounds = array<i64: 64, 128>}, {pipeline_mode = #tpu.pipeline_mode<synchronous>, transform_indices = @transform_1, window_bounds = array<i64: 128, 128>}, {pipeline_mode = #tpu.pipeline_mode<synchronous>, transform_indices = @transform_2, window_bounds = array<i64: 1, 128>}, {pipeline_mode = #tpu.pipeline_mode<synchronous>, transform_indices = @transform_3, window_bounds = array<i64: 1, 128>}, {transform_indices = @transform_4, window_bounds = array<i64: 64, 128>}]} {
    %c0_i32 = arith.constant 0 : i32
    %0 = arith.cmpi eq, %arg0, %c0_i32 : i32
    %1 = arith.extui %0 : i1 to i32
    %c0_i32_0 = arith.constant 0 : i32
    %2 = arith.cmpi ne, %1, %c0_i32_0 : i32
    scf.if %2 {
      %c0 = arith.constant 0 : index
      %c0_2 = arith.constant 0 : index
      %6 = vector.load %arg2[%c0, %c0_2] : memref<64x128xbf16, #tpu.memory_space<vmem>>, vector<64x128xbf16>
      %c0_3 = arith.constant 0 : index
      %c0_4 = arith.constant 0 : index
      %7 = vector.load %arg3[%c0_3, %c0_4] : memref<128x128xbf16, #tpu.memory_space<vmem>>, vector<128x128xbf16>
      %cst = arith.constant dense<0.000000e+00> : vector<64x128xf32>
      %8 = tpu.matmul %6, %7, %cst {dimension_numbers = #tpu.dot_dimension_numbers<[1], [0], [0], [1], [0, 0, 1, 1], [], []>} : vector<64x128xbf16>, vector<128x128xbf16>, vector<64x128xf32> -> vector<64x128xf32>
      %c0_i32_5 = arith.constant 0 : i32
      %9 = arith.cmpi eq, %arg1, %c0_i32_5 : i32
      %10 = arith.extui %9 : i1 to i32
      %c0_i32_6 = arith.constant 0 : i32
      %11 = arith.cmpi ne, %10, %c0_i32_6 : i32
      scf.if %11 {
        %cst_19 = arith.constant 0.000000e+00 : f32
        %28 = vector.broadcast %cst_19 : f32 to vector<1x128xf32>
        %c0_20 = arith.constant 0 : index
        %c0_21 = arith.constant 0 : index
        %29 = vector.load %arg7[%c0_20, %c0_21] : memref<1x128xf32, #tpu.memory_space<vmem>>, vector<1x128xf32>
        tpu.vector_store %arg7[%c0_20, %c0_21], %28 {strides = array<i32>} : memref<1x128xf32, #tpu.memory_space<vmem>>, vector<1x128xf32>,
        %cst_22 = arith.constant 0.000000e+00 : f32
        %30 = vector.broadcast %cst_22 : f32 to vector<1x128xf32>
        %c0_23 = arith.constant 0 : index
        %c0_24 = arith.constant 0 : index
        %31 = vector.load %arg8[%c0_23, %c0_24] : memref<1x128xf32, #tpu.memory_space<vmem>>, vector<1x128xf32>
        tpu.vector_store %arg8[%c0_23, %c0_24], %30 {strides = array<i32>} : memref<1x128xf32, #tpu.memory_space<vmem>>, vector<1x128xf32>,
      } else {
      }
      %c0_7 = arith.constant 0 : index
      %c0_8 = arith.constant 0 : index
      %12 = vector.load %arg7[%c0_7, %c0_8] : memref<1x128xf32, #tpu.memory_space<vmem>>, vector<1x128xf32>
      %cst_9 = arith.constant dense<0.000000e+00> : vector<128xf32>
      %13 = vector.multi_reduction <add>, %8, %cst_9 [0] : vector<64x128xf32> to vector<128xf32>
      %14 = vector.shape_cast %13 : vector<128xf32> to vector<1x128xf32>
      %15 = arith.addf %12, %14 : vector<1x128xf32>
      %c0_10 = arith.constant 0 : index
      %c0_11 = arith.constant 0 : index
      %16 = vector.load %arg7[%c0_10, %c0_11] : memref<1x128xf32, #tpu.memory_space<vmem>>, vector<1x128xf32>
      tpu.vector_store %arg7[%c0_10, %c0_11], %15 {strides = array<i32>} : memref<1x128xf32, #tpu.memory_space<vmem>>, vector<1x128xf32>,
      %c0_12 = arith.constant 0 : index
      %c0_13 = arith.constant 0 : index
      %17 = vector.load %arg8[%c0_12, %c0_13] : memref<1x128xf32, #tpu.memory_space<vmem>>, vector<1x128xf32>
      %18 = arith.mulf %8, %8 : vector<64x128xf32>
      %cst_14 = arith.constant dense<0.000000e+00> : vector<128xf32>
      %19 = vector.multi_reduction <add>, %18, %cst_14 [0] : vector<64x128xf32> to vector<128xf32>
      %20 = vector.shape_cast %19 : vector<128xf32> to vector<1x128xf32>
      %21 = arith.addf %17, %20 : vector<1x128xf32>
      %c0_15 = arith.constant 0 : index
      %c0_16 = arith.constant 0 : index
      %22 = vector.load %arg8[%c0_15, %c0_16] : memref<1x128xf32, #tpu.memory_space<vmem>>, vector<1x128xf32>
      tpu.vector_store %arg8[%c0_15, %c0_16], %21 {strides = array<i32>} : memref<1x128xf32, #tpu.memory_space<vmem>>, vector<1x128xf32>,
      %23 = arith.truncf %8 : vector<64x128xf32> to vector<64x128xbf16>
      %24 = arith.index_cast %arg1 : i32 to index
      %c0_17 = arith.constant 0 : index
      %c0_18 = arith.constant 0 : index
      %25 = vector.load %arg11[%24, %c0_17, %c0_18] : memref<1x64x128xbf16, #tpu.memory_space<vmem>>, vector<1x64x128xbf16>
      %26 = vector.shape_cast %25 : vector<1x64x128xbf16> to vector<64x128xbf16>
      %27 = vector.shape_cast %23 : vector<64x128xbf16> to vector<1x64x128xbf16>
      tpu.vector_store %arg11[%24, %c0_17, %c0_18], %27 {strides = array<i32>} : memref<1x64x128xbf16, #tpu.memory_space<vmem>>, vector<1x64x128xbf16>,
    } else {
    }
    %c1_i32 = arith.constant 1 : i32
    %3 = arith.cmpi eq, %arg0, %c1_i32 : i32
    %4 = arith.extui %3 : i1 to i32
    %c0_i32_1 = arith.constant 0 : i32
    %5 = arith.cmpi ne, %4, %c0_i32_1 : i32
    scf.if %5 {
      %c0_i32_2 = arith.constant 0 : i32
      %6 = arith.cmpi eq, %arg1, %c0_i32_2 : i32
      %7 = arith.extui %6 : i1 to i32
      %c0_i32_3 = arith.constant 0 : i32
      %8 = arith.cmpi ne, %7, %c0_i32_3 : i32
      scf.if %8 {
        %c0_13 = arith.constant 0 : index
        %c0_14 = arith.constant 0 : index
        %28 = vector.load %arg7[%c0_13, %c0_14] : memref<1x128xf32, #tpu.memory_space<vmem>>, vector<1x128xf32>
        %cst_15 = arith.constant 1.562500e-02 : f32
        %29 = vector.broadcast %cst_15 : f32 to vector<1x128xf32>
        %30 = arith.mulf %28, %29 : vector<1x128xf32>
        %c0_16 = arith.constant 0 : index
        %c0_17 = arith.constant 0 : index
        %31 = vector.load %arg8[%c0_16, %c0_17] : memref<1x128xf32, #tpu.memory_space<vmem>>, vector<1x128xf32>
        %cst_18 = arith.constant 1.562500e-02 : f32
        %32 = vector.broadcast %cst_18 : f32 to vector<1x128xf32>
        %33 = arith.mulf %31, %32 : vector<1x128xf32>
        %34 = arith.mulf %30, %30 : vector<1x128xf32>
        %35 = arith.subf %33, %34 : vector<1x128xf32>
        %c0_19 = arith.constant 0 : index
        %c0_20 = arith.constant 0 : index
        %36 = vector.load %arg4[%c0_19, %c0_20] : memref<1x128xf32, #tpu.memory_space<vmem>>, vector<1x128xf32>
        %cst_21 = arith.constant 9.99999974E-6 : f32
        %37 = vector.broadcast %cst_21 : f32 to vector<1x128xf32>
        %38 = arith.addf %35, %37 : vector<1x128xf32>
        %39 = math.rsqrt %38 : vector<1x128xf32>
        %40 = arith.mulf %36, %39 : vector<1x128xf32>
        %c0_22 = arith.constant 0 : index
        %c0_23 = arith.constant 0 : index
        %41 = vector.load %arg9[%c0_22, %c0_23] : memref<1x128xf32, #tpu.memory_space<vmem>>, vector<1x128xf32>
        tpu.vector_store %arg9[%c0_22, %c0_23], %40 {strides = array<i32>} : memref<1x128xf32, #tpu.memory_space<vmem>>, vector<1x128xf32>,
        %c0_24 = arith.constant 0 : index
        %c0_25 = arith.constant 0 : index
        %42 = vector.load %arg5[%c0_24, %c0_25] : memref<1x128xf32, #tpu.memory_space<vmem>>, vector<1x128xf32>
        %43 = arith.mulf %30, %40 : vector<1x128xf32>
        %44 = arith.subf %42, %43 : vector<1x128xf32>
        %c0_26 = arith.constant 0 : index
        %c0_27 = arith.constant 0 : index
        %45 = vector.load %arg10[%c0_26, %c0_27] : memref<1x128xf32, #tpu.memory_space<vmem>>, vector<1x128xf32>
        tpu.vector_store %arg10[%c0_26, %c0_27], %44 {strides = array<i32>} : memref<1x128xf32, #tpu.memory_space<vmem>>, vector<1x128xf32>,
      } else {
      }
      %9 = arith.index_cast %arg1 : i32 to index
      %c0 = arith.constant 0 : index
      %c0_4 = arith.constant 0 : index
      %10 = vector.load %arg11[%9, %c0, %c0_4] : memref<1x64x128xbf16, #tpu.memory_space<vmem>>, vector<1x64x128xbf16>
      %11 = vector.shape_cast %10 : vector<1x64x128xbf16> to vector<64x128xbf16>
      %12 = arith.extf %11 : vector<64x128xbf16> to vector<64x128xf32>
      %c0_5 = arith.constant 0 : index
      %c0_6 = arith.constant 0 : index
      %13 = vector.load %arg9[%c0_5, %c0_6] : memref<1x128xf32, #tpu.memory_space<vmem>>, vector<1x128xf32>
      %14 = vector.broadcast %13 : vector<1x128xf32> to vector<64x128xf32>
      %15 = arith.mulf %12, %14 : vector<64x128xf32>
      %c0_7 = arith.constant 0 : index
      %c0_8 = arith.constant 0 : index
      %16 = vector.load %arg10[%c0_7, %c0_8] : memref<1x128xf32, #tpu.memory_space<vmem>>, vector<1x128xf32>
      %17 = vector.broadcast %16 : vector<1x128xf32> to vector<64x128xf32>
      %18 = arith.addf %15, %17 : vector<64x128xf32>
      %cst = arith.constant 5.000000e-01 : f32
      %19 = vector.broadcast %cst : f32 to vector<64x128xf32>
      %20 = arith.mulf %19, %18 : vector<64x128xf32>
      %cst_9 = arith.constant 0.707106769 : f32
      %21 = vector.broadcast %cst_9 : f32 to vector<64x128xf32>
      %22 = arith.mulf %18, %21 : vector<64x128xf32>
      %23 = math.erf %22 : vector<64x128xf32>
      %cst_10 = arith.constant 1.000000e+00 : f32
      %24 = vector.broadcast %cst_10 : f32 to vector<64x128xf32>
      %25 = arith.addf %24, %23 : vector<64x128xf32>
      %26 = arith.mulf %20, %25 : vector<64x128xf32>
      %c0_11 = arith.constant 0 : index
      %c0_12 = arith.constant 0 : index
      %27 = vector.load %arg6[%c0_11, %c0_12] : memref<64x128xf32, #tpu.memory_space<vmem>>, vector<64x128xf32>
      tpu.vector_store %arg6[%c0_11, %c0_12], %26 {strides = array<i32>} : memref<64x128xf32, #tpu.memory_space<vmem>>, vector<64x128xf32>,
    } else {
    }
    return
  }
  func.func @transform_0(%arg0: i32, %arg1: i32) -> (i32, i32) {
    %c1_i32 = arith.constant 1 : i32
    %0 = arith.subi %c1_i32, %arg0 : i32
    %1 = arith.muli %arg1, %0 : i32
    %c0_i32 = arith.constant 0 : i32
    %c0_i32_0 = arith.constant 0 : i32
    return %1, %c0_i32 : i32, i32
  }
  func.func @transform_1(%arg0: i32, %arg1: i32) -> (i32, i32) {
    %c0_i32 = arith.constant 0 : i32
    %c0_i32_0 = arith.constant 0 : i32
    %c0_i32_1 = arith.constant 0 : i32
    return %c0_i32, %c0_i32_0 : i32, i32
  }
  func.func @transform_2(%arg0: i32, %arg1: i32) -> (i32, i32) {
    %c0_i32 = arith.constant 0 : i32
    %c0_i32_0 = arith.constant 0 : i32
    %c0_i32_1 = arith.constant 0 : i32
    return %c0_i32, %c0_i32_0 : i32, i32
  }
  func.func @transform_3(%arg0: i32, %arg1: i32) -> (i32, i32) {
    %c0_i32 = arith.constant 0 : i32
    %c0_i32_0 = arith.constant 0 : i32
    %c0_i32_1 = arith.constant 0 : i32
    return %c0_i32, %c0_i32_0 : i32, i32
  }
  func.func @transform_4(%arg0: i32, %arg1: i32) -> (i32, i32) {
    %0 = arith.muli %arg0, %arg1 : i32
    %c0_i32 = arith.constant 0 : i32
    %c0_i32_0 = arith.constant 0 : i32
    return %0, %c0_i32 : i32, i32
  }
}

</mosaic_0001>

<bundles_post_ra>
// kernel: tpu_custom_call.1
= control target key start
LH: loop header
LB: loop body
LE: loop exit
PB: predicated region body
PF: predicated region fallthrough
CT: control target
= control target key end

     0   :  { %9 = vsyncpa [#allocation8], 0  ;;  %s1169_s0 = inlined_call_operand.hbm [shape: bf16[64,128], index: 0, kind: input, shape index: {}]   ;;  %s1170_s1 = inlined_call_operand.hbm [shape: bf16[128,128], index: 1, kind: input, shape index: {}]   ;;  %s1171_s2 = inlined_call_operand.vmem [shape: f32[1,128], index: 2, kind: input, shape index: {}]   ;;  %s1172_s3 = inlined_call_operand.vmem [shape: f32[1,128], index: 3, kind: input, shape index: {}]   ;;  %s1173_s4 = inlined_call_operand.hbm [shape: f32[64,128], index: 4, kind: output, shape index: {}]  }
   0x1   :  { %11 = vsyncpa [#allocation8 + $0x1], 0 }
   0x2   :  { %12 = vsyncpa [#allocation11], 0 }
   0x3   :  { %13 = vsyncpa [#allocation9], 0 }
   0x4   :  { %15 = vsyncpa [#allocation9 + $0x1], 0  ;;  %s1031_s15 = smov 0   ;;  %s1033_s16 = smov 0  }
   0x5   :  { %s1035_s17 = smov 0  }
   0x6 LB: > { %s705_s18 = sadd.s32 4294967295, %s996_s17   ;;  %s706_s19 = sadd.s32 4294967294, %s996_s17   ;;  %s996_s17 = sphi %s1035_s17, %s21_s17   ;;  %s992_s16 = sphi %s1033_s16, %s1188_s16   ;;  %s988_s15 = sphi %s1031_s15, %s1187_s15  }
   0x7   : > { %s33_s20 = sadd.s32 1, %s992_s16  ;;  %p707_p0 = scmp.ge.s32.totalorder %s996_s17, 1 }
   0x8   : > { %p35_p1 = scmp.ge.s32.totalorder %s33_s20, 2  ;;  %p159_p2 = scmp.lt.s32.totalorder %s996_s17, 3 }
   0x9   : > { %p1053_p3 = scmp.eq.s32.totalorder %s705_s18, 0  ;;  %s998_s23 = smov [#allocation10]  }
   0xa   : > { %s1190_s20 = smov (%p35_p1, %s33_s20), 0  ;;  %p1059_p4 = pnand %p707_p0, %p159_p2 }
   0xb   : > { %s1177_s21 = scalar_select %p1053_p3, 1, 0 }
   0xc   : > { %s1178_s22 = scalar_select %p1059_p4, 1, 0 }
   0xd   : > { %s171_s24 = sshll.u32 %s998_s23, 4  ;;  %p798_p5 = pneg %p1059_p4  ;;  %s172_s24 = int_to_ptr.vmem [resolvable:$true] %s171_s24 }
   0xe   : > { %s880_s28 = scalar_lea.hbm %s1170_s1, 1024 }
   0xf   : > { %p1068_p7 = pnand %p1053_p3, %p798_p5  ;;  %p881_p10 = scmp.ne.s32.totalorder %s1170_s1, %s880_s28 }
  0x10   : > { %p887_p0 = scmp.lt.u32.totalorder %s880_s28, %s1170_s1 }
  0x11   : > { %p882_p11 = pneg %p1068_p7 }
  0x13   : > { %p883_p12 = pnand %p882_p11, %p881_p10 }
  0x15   : > { %p884_p13 = pneg %p883_p12 }
  0x17   : > { %p889_p1 = pnand %p887_p0, %p884_p13 }
  0x19   : > { %892 = shalt.err (!%p889_p1)
}
  0x1a   : > { %s893_s7 = scalar_lea.vmem %s172_s24, 1024  ;;  %p901_p9 = scmp.lt.s32.totalorder %s172_s24, %s172_s24 }
  0x1b   : > { %p894_p2 = scmp.ne.s32.totalorder %s172_s24, %s893_s7  ;;  %p902_p8 = scmp.lt.s32.totalorder %s893_s7, %s893_s7 }
  0x1d   : > { %p896_p5 = pnand %p894_p2, %p882_p11  ;;  %p903_p3 = por %p902_p8, %p901_p9 }
  0x1f   : > { %p897_p6 = pneg %p896_p5 }
  0x21   : > { %p904_p4 = pnand %p903_p3, %p897_p6 }
  0x23   : > { %907 = shalt.err (!%p904_p4)
}
  0x24   : > { %s999_s8 = smov 64   ;;  %s1000_s9 = smov 4  }
  0x25   : > { %801 = dma.hbm_to_vmem [thread:$0]  (!%p1068_p7), %s1170_s1, 1024, %s172_s24, [#allocation11], %s999_s8, %s999_s8, %s1000_s9  }
  0x26   : > { %s1001_s12 = smov [#allocation7]   ;;  %p1180_p10 = scmp.lt.s32.totalorder %s996_s17, 2 }
  0x27   : > { %s204_s13 = sshll.u32 %s1001_s12, 4  ;;  %p1181_p11 = scmp.eq.s32.totalorder %s996_s17, 0  ;;  %s205_s13 = int_to_ptr.vmem [resolvable:$true] %s204_s13 }
  0x28   : > { %s908_s27 = scalar_lea.hbm %s1169_s0, 512 }
  0x29   : > { %p1094_p12 = pnand %p1181_p11, %p1180_p10  ;;  %p909_p3 = scmp.ne.s32.totalorder %s1169_s0, %s908_s27 }
  0x2a   : > { %p915_p8 = scmp.lt.u32.totalorder %s908_s27, %s1169_s0 }
  0x2b   : > { %p910_p4 = pneg %p1094_p12 }
  0x2d   : > { %p911_p6 = pnand %p910_p4, %p909_p3 }
  0x2f   : > { %p912_p7 = pneg %p911_p6 }
  0x31   : > { %p917_p9 = pnand %p915_p8, %p912_p7 }
  0x33   : > { %920 = shalt.err (!%p917_p9)
}
  0x34   : > { %s921_s30 = scalar_lea.vmem %s205_s13, 512  ;;  %s928_s5 = scalar_lea.vmem %s205_s13, 1024 }
  0x35   : > { %p922_p13 = scmp.ne.s32.totalorder %s205_s13, %s921_s30  ;;  %p929_p2 = scmp.lt.s32.totalorder %s205_s13, %s205_s13 }
  0x36   : > { %p930_p5 = scmp.lt.s32.totalorder %s928_s5, %s921_s30 }
  0x37   : > { %p924_p0 = pnand %p922_p13, %p910_p4 }
  0x38   : > { %p931_p10 = por %p930_p5, %p929_p2 }
  0x39   : > { %p925_p1 = pneg %p924_p0 }
  0x3b   : > { %p932_p11 = pnand %p931_p10, %p925_p1 }
  0x3d   : > { %935 = shalt.err (!%p932_p11)
}
  0x3e   : > { %805 = dma.hbm_to_vmem [thread:$0]  (!%p1094_p12), %s1169_s0, 512, %s205_s13, [#allocation8], %s999_s8, %s999_s8, %s1000_s9  }
  0x3f   : > { %p1183_p3 = scmp.ne.s32.totalorder %s1178_s22, 0 }
  0x40   : > { %p1184_p6 = scmp.ne.s32.totalorder (!%p1183_p3), %s1177_s21, 0 }
  0x41   : > { %216 = sbr.rel (%p1183_p3) target bundleno = 444 (0x1bc), region = 36 }
  0x48   : > { %975 = dma.done.wait (%p1184_p6), [#allocation8], 512  }
  0x49   : > { %977 = vsyncadd (%p1184_p6), [#allocation8], 4294966784 }
  0x4a   : > { %979 = dma.done.wait (%p1184_p6), [#allocation11], 1024  }
  0x4b   : > { %981 = vsyncadd (%p1184_p6), [#allocation11], 4294966272  ;;  %p714_p4 = scmp.ne.s32.totalorder %s988_s15, 0 }
  0x4c   : > { %v850_v0 = vld [vmem:[#allocation10] sm:$0xff] (!%p714_p4)   ;;  %v851_v1 = vld [vmem:[#allocation10 + $0x8] sm:$0xff] (!%p714_p4)   ;;  %v852_v2 = vld [vmem:[#allocation10 + $0x10] sm:$0xff] (!%p714_p4)   ;;  %v1002_v12 = vmov (!%p714_p4), 0.0  }
  0x4d   : > { %260 = sbr.rel (%p714_p4) target bundleno = 355 (0x163), region = 48  ;;  %746 = vmatprep.subr.bf16.mxu0 (!%p714_p4), %v850_v0  ;;  %770 = vmatprep.subr.bf16.mxu1 (!%p714_p4), %v850_v0  ;;  %v853_v3 = vld [vmem:[#allocation10 + $0x18] sm:$0xff] (!%p714_p4)   ;;  %v858_v4 = vld [vmem:[#allocation7] sm:$0xff] (!%p714_p4)   ;;  %v860_v5 = vld [vmem:[#allocation7 + $0x10] sm:$0xff] (!%p714_p4)   ;;  %426 = vst [vmem:[#allocation2] sm:$0x1] (!%p714_p4), %v1002_v12 }
  0x4e   : > { %747 = vmatpush3.bf16.msra.mxu0 (!%p714_p4), %v850_v0  ;;  %778 = vmatpush3.bf16.msra.mxu1 (!%p714_p4), %v850_v0  ;;  %v854_v6 = vld [vmem:[#allocation10 + $0x20] sm:$0xff] (!%p714_p4)   ;;  %v855_v7 = vld [vmem:[#allocation10 + $0x28] sm:$0xff] (!%p714_p4)   ;;  %v856_v8 = vld [vmem:[#allocation10 + $0x30] sm:$0xff] (!%p714_p4)   ;;  %427 = vst [vmem:[#allocation3] sm:$0x1] (!%p714_p4), %v1002_v12 }
  0x4f   : > { %748 = vmatprep.subr.bf16.mxu0 (!%p714_p4), %v851_v1  ;;  %771 = vmatprep.subr.bf16.mxu1 (!%p714_p4), %v851_v1  ;;  %v857_v9 = vld [vmem:[#allocation10 + $0x38] sm:$0xff] (!%p714_p4)   ;;  %v859_v10 = vld [vmem:[#allocation7 + $0x8] sm:$0xff] (!%p714_p4)  }
  0x50   : > { %762 = vmatprep.mubr.bf16.mxu0 (!%p714_p4), %v858_v4  ;;  %766 = vmatprep.mubr.bf16.mxu1 (!%p714_p4), %v860_v5  ;;  %v861_v11 = vld [vmem:[#allocation7 + $0x18] sm:$0xff] (!%p714_p4)  }
  0x52   : > { %749 = vmatpush3.bf16.msra.mxu0 (!%p714_p4), %v851_v1  ;;  %779 = vmatpush3.bf16.msra.mxu1 (!%p714_p4), %v851_v1 }
  0x53   : > { %750 = vmatprep.subr.bf16.mxu0 (!%p714_p4), %v852_v2  ;;  %772 = vmatprep.subr.bf16.mxu1 (!%p714_p4), %v852_v2 }
  0x54   : > { %v428_v56 = vld [vmem:[#allocation2] sm:$0x1] }
  0x55   : > { %v444_v59 = vld [vmem:[#allocation3] sm:$0x1] }
  0x56   : > { %751 = vmatpush3.bf16.msra.mxu0 %v852_v2  ;;  %780 = vmatpush3.bf16.msra.mxu1 %v852_v2 }
  0x57   : > { %752 = vmatprep.subr.bf16.mxu0 %v853_v3  ;;  %773 = vmatprep.subr.bf16.mxu1 %v853_v3 }
  0x5a   : > { %753 = vmatpush3.bf16.msra.mxu0 %v853_v3  ;;  %781 = vmatpush3.bf16.msra.mxu1 %v853_v3 }
  0x5b   : > { %754 = vmatprep.subr.bf16.mxu0 %v854_v6  ;;  %774 = vmatprep.subr.bf16.mxu1 %v854_v6 }
  0x5e   : > { %755 = vmatpush3.bf16.msra.mxu0 %v854_v6  ;;  %782 = vmatpush3.bf16.msra.mxu1 %v854_v6 }
  0x5f   : > { %756 = vmatprep.subr.bf16.mxu0 %v855_v7  ;;  %775 = vmatprep.subr.bf16.mxu1 %v855_v7 }
  0x62   : > { %757 = vmatpush3.bf16.msra.mxu0 %v855_v7  ;;  %783 = vmatpush3.bf16.msra.mxu1 %v855_v7 }
  0x63   : > { %758 = vmatprep.subr.bf16.mxu0 %v856_v8  ;;  %776 = vmatprep.subr.bf16.mxu1 %v856_v8 }
  0x66   : > { %759 = vmatpush3.bf16.msra.mxu0 %v856_v8  ;;  %784 = vmatpush3.bf16.msra.mxu1 %v856_v8 }
  0x67   : > { %760 = vmatprep.subr.bf16.mxu0 %v857_v9  ;;  %777 = vmatprep.subr.bf16.mxu1 %v857_v9 }
  0x6a   : > { %761 = vmatpush3.bf16.msra.mxu0 %v857_v9  ;;  %785 = vmatpush3.bf16.msra.mxu1 %v857_v9 }
  0x6d   : > { %763 = vmatmul.mubr.bf16.vlgmr.msra.gmra.mrb[0].mxu0 %v859_v10  ;;  %767 = vmatmul.mubr.bf16.vlgmr.msra.gmra.mrb[0].mxu1 %v861_v11 }
 0x140   : > { %v764_v13 = vpop.f32.mrb[0].mxu0  ;;  %v768_v14 = vpop.f32.mrb[0].mxu1 }
 0x141   : > { %v391_v15 = vpop.f32.mrb[1].mxu0  ;;  %v407_v16 = vpop.f32.mrb[1].mxu1  ;;  %v447_v28 = vmul.f32 %v764_v13, %v764_v13  ;;  %v451_v40 = vmul.f32 %v768_v14, %v768_v14 }
 0x142   : > { %v765_v17 = vpop.f32.mrb[2].mxu0  ;;  %v769_v18 = vpop.f32.mrb[2].mxu1  ;;  %v445_v23 = vmul.f32 %v391_v15, %v391_v15  ;;  %v449_v34 = vmul.f32 %v407_v16, %v407_v16 }
 0x143   : > { %v469_v19 = vpack.c.bf16 %v765_v17, %v764_v13  ;;  %v394_v20 = vpop.f32.mrb[3].mxu0  ;;  %v471_v21 = vpack.c.bf16 %v769_v18, %v768_v14  ;;  %v410_v22 = vpop.f32.mrb[3].mxu1  ;;  %v448_v31 = vmul.f32 %v765_v17, %v765_v17  ;;  %v452_v43 = vmul.f32 %v769_v18, %v769_v18 }
 0x144   : > { %v429_v24 = vadd.f32 %v394_v20, %v391_v15  ;;  %v446_v25 = vmul.f32 %v394_v20, %v394_v20  ;;  %v468_v26 = vpack.c.bf16 %v394_v20, %v391_v15  ;;  %v470_v27 = vpack.c.bf16 %v410_v22, %v407_v16 }
 0x145   : > { %476 = vst [vmem:[#allocation6 + $0x8] sm:$0xff] %v469_v19  ;;  %478 = vst [vmem:[#allocation6 + $0x18] sm:$0xff] %v471_v21  ;;  %v450_v39 = vmul.f32 %v410_v22, %v410_v22 }
 0x146   : > { %v430_v29 = vadd.f32 %v764_v13, %v429_v24  ;;  %v453_v30 = vadd.f32 %v446_v25, %v445_v23  ;;  %475 = vst [vmem:[#allocation6] sm:$0xff] %v468_v26  ;;  %477 = vst [vmem:[#allocation6 + $0x10] sm:$0xff] %v470_v27 }
 0x148   : > { %v454_v32 = vadd.f32 %v453_v30, %v447_v28  ;;  %v431_v33 = vadd.f32 %v765_v17, %v430_v29 }
 0x14a   : > { %v432_v35 = vadd.f32 %v431_v33, %v407_v16  ;;  %v455_v36 = vadd.f32 %v454_v32, %v448_v31 }
 0x14c   : > { %v456_v37 = vadd.f32 %v455_v36, %v449_v34  ;;  %v433_v38 = vadd.f32 %v432_v35, %v410_v22 }
 0x14e   : > { %v434_v41 = vadd.f32 %v768_v14, %v433_v38  ;;  %v457_v42 = vadd.f32 %v456_v37, %v450_v39 }
 0x150   : > { %v435_v44 = vadd.f32 %v769_v18, %v434_v41  ;;  %v458_v45 = vadd.f32 %v457_v42, %v451_v40 }
 0x152   : > { %v436_v46 = vrot.slane %v435_v44, 4  ;;  %v459_v47 = vadd.f32 %v458_v45, %v452_v43 }
 0x154   : > { %v437_v48 = vadd.f32 %v436_v46, %v435_v44  ;;  %v460_v49 = vrot.slane %v459_v47, 4 }
 0x156   : > { %v438_v50 = vrot.slane %v437_v48, 2  ;;  %v461_v51 = vadd.f32 %v460_v49, %v459_v47 }
 0x158   : > { %v439_v52 = vadd.f32 %v438_v50, %v437_v48  ;;  %v462_v53 = vrot.slane %v461_v51, 2 }
 0x15a   : > { %v440_v54 = vrot.slane %v439_v52, 1  ;;  %v463_v55 = vadd.f32 %v462_v53, %v461_v51 }
 0x15c   : > { %v441_v57 = vadd.f32 %v440_v54, %v439_v52  ;;  %v464_v58 = vrot.slane %v463_v55, 1 }
 0x15e   : > { %v442_v60 = vadd.f32 %v441_v57, %v428_v56  ;;  %v465_v61 = vadd.f32 %v464_v58, %v463_v55 }
 0x160   : > { %443 = vst [vmem:[#allocation2] sm:$0x1] %v442_v60  ;;  %v466_v62 = vadd.f32 %v465_v61, %v444_v59 }
 0x162   : > { %467 = vst [vmem:[#allocation3] sm:$0x1] %v466_v62 }
 0x163 PF: > { %p727_p12 = scmp.ne.s32.totalorder %s988_s15, 1 }
 0x164   : > { %v493_v6 = vld [vmem:[%s1171_s2] sm:$0x1] (!%p727_p12)  ;;  %v505_v11 = vld [vmem:[#allocation6] sm:$0xff] (!%p727_p12)  ;;  %v506_v12 = vld [vmem:[#allocation6 + $0x8] sm:$0xff] (!%p727_p12) }
 0x165   : > { %482 = sbr.rel (%p727_p12) target bundleno = 420 (0x1a4), region = 56  ;;  %v498_v9 = vld [vmem:[%s1172_s3] sm:$0x1] (!%p727_p12)  ;;  %v507_v14 = vld [vmem:[#allocation6 + $0x10] sm:$0xff] (!%p727_p12)  ;;  %v509_v16 = vunpack.c.l.bf16 (!%p727_p12), %v505_v11  ;;  %v510_v17 = vunpack.c.h.bf16 (!%p727_p12), %v505_v11  ;;  %v511_v18 = vunpack.c.l.bf16 (!%p727_p12), %v506_v12  ;;  %v512_v19 = vunpack.c.h.bf16 (!%p727_p12), %v506_v12 }
 0x166   : > { %v508_v15 = vld [vmem:[#allocation6 + $0x18] sm:$0xff] (!%p727_p12)  ;;  %v513_v20 = vunpack.c.l.bf16 (!%p727_p12), %v507_v14  ;;  %v514_v21 = vunpack.c.h.bf16 (!%p727_p12), %v507_v14 }
 0x167   : > { %v487_v63 = vld [vmem:[#allocation2] sm:$0x1] (!%p727_p12)  ;;  %v515_v22 = vunpack.c.l.bf16 (!%p727_p12), %v508_v15  ;;  %v516_v24 = vunpack.c.h.bf16 (!%p727_p12), %v508_v15 }
 0x168   : > { %v488_v1 = vmul.f32 (!%p727_p12), 0.015625, %v487_v63 }
 0x169   : > { %v489_v0 = vld [vmem:[#allocation3] sm:$0x1] (!%p727_p12) }
 0x16a   : > { %v490_v2 = vmul.f32 (!%p727_p12), 0.015625, %v489_v0  ;;  %v491_v3 = vmul.f32 (!%p727_p12), %v488_v1, %v488_v1 }
 0x16c   : > { %v492_v4 = vsub.f32 %v490_v2, %v491_v3 }
 0x16e   : > { %v494_v5 = vadd.f32 1e-05, %v492_v4 }
 0x170   : > { %862 = vrsqrt.f32 %v494_v5 }
 0x17a   : > { %v863_v7 = vpop.eup %862 }
 0x17b   : > { %v496_v8 = vmul.f32 %v863_v7, %v493_v6 }
 0x17d   : > { %497 = vst [vmem:[#allocation4] sm:$0x1] %v496_v8  ;;  %v499_v10 = vmul.f32 %v496_v8, %v488_v1 }
 0x17f   : > { %v500_v13 = vsub.f32 %v498_v9, %v499_v10 }
 0x181   : > { %501 = vst [vmem:[#allocation5] sm:$0x1] %v500_v13 }
 0x184   : > { %v728_v23 = vld [vmem:[#allocation4] ss:$0 sm:$0xff] }
 0x185   : > { %v524_v25 = vmul.f32 %v728_v23, %v509_v16  ;;  %v525_v26 = vmul.f32 %v728_v23, %v510_v17  ;;  %v526_v27 = vmul.f32 %v728_v23, %v511_v18  ;;  %v527_v28 = vmul.f32 %v728_v23, %v512_v19 }
 0x186   : > { %v528_v29 = vmul.f32 %v728_v23, %v513_v20  ;;  %v529_v30 = vmul.f32 %v728_v23, %v514_v21  ;;  %v530_v31 = vmul.f32 %v728_v23, %v515_v22  ;;  %v531_v33 = vmul.f32 %v728_v23, %v516_v24 }
 0x188   : > { %v729_v32 = vld [vmem:[#allocation5] ss:$0 sm:$0xff] }
 0x189   : > { %v539_v34 = vadd.f32 %v729_v32, %v524_v25  ;;  %v540_v35 = vadd.f32 %v729_v32, %v525_v26  ;;  %v541_v36 = vadd.f32 %v729_v32, %v526_v27  ;;  %v542_v37 = vadd.f32 %v729_v32, %v527_v28 }
 0x18a   : > { %v543_v38 = vadd.f32 %v729_v32, %v528_v29  ;;  %v544_v39 = vadd.f32 %v729_v32, %v529_v30  ;;  %v545_v42 = vadd.f32 %v729_v32, %v530_v31  ;;  %v546_v45 = vadd.f32 %v729_v32, %v531_v33 }
 0x18b   : > { %v555_v40 = vmul.f32 0.70710677, %v539_v34  ;;  %v556_v41 = vmul.f32 0.70710677, %v540_v35  ;;  %v557_v43 = vmul.f32 0.70710677, %v541_v36 }
 0x18c   : > { %v558_v44 = vmul.f32 0.70710677, %v542_v37  ;;  %v559_v46 = vmul.f32 0.70710677, %v543_v38  ;;  %v560_v47 = vmul.f32 0.70710677, %v544_v39 }
 0x18d   : > { %864 = verf.f32 %v555_v40  ;;  %v561_v48 = vmul.f32 0.70710677, %v545_v42  ;;  %v562_v49 = vmul.f32 0.70710677, %v546_v45  ;;  %v547_v52 = vmul.f32 0.5, %v539_v34 }
 0x18e   : > { %866 = verf.f32 %v556_v41  ;;  %v548_v55 = vmul.f32 0.5, %v540_v35  ;;  %v549_v59 = vmul.f32 0.5, %v541_v36  ;;  %v550_v63 = vmul.f32 0.5, %v542_v37 }
 0x18f   : > { %868 = verf.f32 %v557_v43  ;;  %v551_v3 = vmul.f32 0.5, %v543_v38  ;;  %v552_v7 = vmul.f32 0.5, %v544_v39  ;;  %v553_v11 = vmul.f32 0.5, %v545_v42 }
 0x190   : > { %870 = verf.f32 %v558_v44  ;;  %v554_v14 = vmul.f32 0.5, %v546_v45 }
 0x191   : > { %872 = verf.f32 %v559_v46 }
 0x192   : > { %874 = verf.f32 %v560_v47 }
 0x193   : > { %876 = verf.f32 %v561_v48 }
 0x194   : > { %878 = verf.f32 %v562_v49 }
 0x197   : > { %v865_v50 = vpop.eup %864 }
 0x198   : > { %v867_v51 = vpop.eup %866  ;;  %v571_v53 = vadd.f32 1.0, %v865_v50 }
 0x199   : > { %v869_v54 = vpop.eup %868  ;;  %v572_v56 = vadd.f32 1.0, %v867_v51 }
 0x19a   : > { %v871_v57 = vpop.eup %870  ;;  %v579_v58 = vmul.f32 %v571_v53, %v547_v52  ;;  %v573_v60 = vadd.f32 1.0, %v869_v54 }
 0x19b   : > { %v873_v61 = vpop.eup %872  ;;  %v580_v62 = vmul.f32 %v572_v56, %v548_v55  ;;  %v574_v0 = vadd.f32 1.0, %v871_v57 }
 0x19c   : > { %v875_v1 = vpop.eup %874  ;;  %587 = vst [vmem:[#allocation12] sm:$0xff] %v579_v58  ;;  %v581_v2 = vmul.f32 %v573_v60, %v549_v59  ;;  %v575_v4 = vadd.f32 1.0, %v873_v61 }
 0x19d   : > { %v877_v5 = vpop.eup %876  ;;  %588 = vst [vmem:[#allocation12 + $0x8] sm:$0xff] %v580_v62  ;;  %v582_v6 = vmul.f32 %v574_v0, %v550_v63  ;;  %v576_v8 = vadd.f32 1.0, %v875_v1 }
 0x19e   : > { %v879_v9 = vpop.eup %878  ;;  %589 = vst [vmem:[#allocation12 + $0x10] sm:$0xff] %v581_v2  ;;  %v583_v10 = vmul.f32 %v575_v4, %v551_v3  ;;  %v577_v12 = vadd.f32 1.0, %v877_v5 }
 0x19f   : > { %590 = vst [vmem:[#allocation12 + $0x18] sm:$0xff] %v582_v6  ;;  %v584_v13 = vmul.f32 %v576_v8, %v552_v7  ;;  %v578_v15 = vadd.f32 1.0, %v879_v9 }
 0x1a0   : > { %591 = vst [vmem:[#allocation12 + $0x20] sm:$0xff] %v583_v10  ;;  %v585_v16 = vmul.f32 %v577_v12, %v553_v11 }
 0x1a1   : > { %592 = vst [vmem:[#allocation12 + $0x28] sm:$0xff] %v584_v13  ;;  %v586_v17 = vmul.f32 %v578_v15, %v554_v14 }
 0x1a2   : > { %593 = vst [vmem:[#allocation12 + $0x30] sm:$0xff] %v585_v16 }
 0x1a3   : > { %594 = vst [vmem:[#allocation12 + $0x38] sm:$0xff] %v586_v17 }
 0x1a4 PF: > { %p1134_p7 = scmp.eq.s32.totalorder %s705_s18, 1  ;;  %s1003_s10 = smov [#allocation12]  }
 0x1a5   : > { %s610_s11 = sshll.u32 %s1003_s10, 4  ;;  %s611_s11 = int_to_ptr.vmem [resolvable:$true] %s610_s11 }
 0x1a6   : > { %s936_s12 = scalar_lea.vmem %s611_s11, 1024  ;;  %s942_s13 = scalar_lea.vmem %s611_s11, 2048 }
 0x1a7   : > { %p937_p8 = scmp.ne.s32.totalorder %s611_s11, %s936_s12  ;;  %p943_p0 = scmp.lt.s32.totalorder %s611_s11, %s611_s11 }
 0x1a8   : > { %p944_p1 = scmp.lt.s32.totalorder %s942_s13, %s936_s12 }
 0x1a9   : > { %p938_p9 = pnand %p937_p8, %p1134_p7 }
 0x1aa   : > { %p945_p2 = por %p944_p1, %p943_p0 }
 0x1ab   : > { %p939_p13 = pneg %p938_p9 }
 0x1ad   : > { %p946_p5 = pnand %p945_p2, %p939_p13 }
 0x1af   : > { %949 = shalt.err (!%p946_p5)
}
 0x1b0   : > { %s950_s23 = scalar_lea.hbm %s1173_s4, 1024 }
 0x1b1   : > { %p951_p10 = scmp.ne.s32.totalorder %s1173_s4, %s950_s23  ;;  %p956_p6 = scmp.lt.u32.totalorder %s950_s23, %s1173_s4 }
 0x1b3   : > { %p952_p11 = pnand %p951_p10, %p1134_p7 }
 0x1b5   : > { %p953_p3 = pneg %p952_p11 }
 0x1b7   : > { %p958_p4 = pnand %p956_p6, %p953_p3 }
 0x1b9   : > { %961 = shalt.err (!%p958_p4)
}
 0x1ba   : > { %s1004_s24 = smov 128   ;;  %s1005_s29 = smov 8  }
 0x1bb   : > { %795 = dma.vmem_to_hbm [thread:$0]  (%p1134_p7), %s611_s11, 1024, %s1173_s4, [#allocation9], %s1004_s24, %s1004_s24, %s1005_s29  }
 0x1bc PF: > { %p817_p12 = scmp.eq.s32.totalorder %s706_s19, 1  ;;  %p1186_p8 = scmp.ge.s32.totalorder %s996_s17, 2 }
 0x1be   : > { %p807_p9 = pnand %p817_p12, %p1186_p8 }
 0x1c0   : > { %983 = dma.done.wait (!%p807_p9), [#allocation9], 1024  }
 0x1c1   : > { %985 = vsyncadd (!%p807_p9), [#allocation9], 4294966272  ;;  %s21_s17 = sadd.s32 1, %s996_s17   ;;  %s1187_s15 = smov %s992_s16 }
 0x1c2   : > { %p18_p13 = scmp.ge.s32.totalorder %s21_s17, 4   ;;  %s1188_s16 = smov %s1190_s20 }
 0x1c4   :  { %20 = sbr.rel (!%p18_p13) target bundleno = 6 (0x6), region = 103 }
 0x1cb   :  { %631 = vsyncpa [#allocation8], 1 }
 0x1cc   :  { %633 = vsyncpa [#allocation8 + $0x1], 1 }
 0x1cd   :  { %634 = vsyncpa [#allocation11], 1 }
 0x1ce   :  { %635 = vsyncpa [#allocation9], 1 }
 0x1cf   :  { %637 = vsyncpa [#allocation9 + $0x1], 1 }

</bundles_post_ra>
